<compile_context>
chip_gen: v6e
topology: v6e:2x2x1
jax: 0.10.0
libtpu: 0.0.40
codegen_flags: <defaults>
</compile_context>

<pallas_src>
import functools

import jax
import jax.numpy as jnp
from jax.experimental import pallas as pl
from jax.experimental.pallas import tpu as pltpu


def _reduction_conv_kernel(w_ref, feat_ref, out_ref, *, compute_dtype):
    """out[b, :, hw_tile] = relu(W_b @ feat[b, :, hw_tile])   (1x1 dynamic conv)."""
    w = w_ref[0].astype(compute_dtype)          # (F, C_in)   resident across HW tiles
    x = feat_ref[0].astype(compute_dtype)       # (C_in, T)   in-VMEM cast (no extra HBM pass)
    acc = jnp.dot(w, x, preferred_element_type=jnp.float32)
    out_ref[0] = jnp.maximum(acc, 0.0).astype(out_ref.dtype)


def _default_hw_tile(hw, c_in, feat_channels, feat_dtype, out_dtype):
    """Largest lane-dense (multiple-of-128) HW tile fitting a 24 MiB
    double-buffered working set (under the 32 MiB scoped-VMEM limit we set)."""
    in_b = jnp.dtype(feat_dtype).itemsize
    out_b = jnp.dtype(out_dtype).itemsize
    budget = 24 * 1024 * 1024
    w_bytes = 2 * feat_channels * c_in * 4            # resident weight (double-buffered, f32 worst case)
    per_col = 2 * (c_in * in_b + feat_channels * out_b)
    cap = max(128, (budget - w_bytes) // per_col)
    tile = min(hw, cap)
    if tile < hw:
        tile = max(128, (tile // 128) * 128)           # lane-dense; partial last block is fine
    return int(tile)


def task_decomposition(feat, params, *, feat_channels, stacked_convs,
                       avg_feat=None, compute_dtype=None, hw_tile=None):
    """feat: (B, C_in, H, W) NCHW with C_in = feat_channels * stacked_convs."""
    w1, b1, w2, b2, wred = params
    b, c_in, h, w = feat.shape
    assert c_in == feat_channels * stacked_convs
    hw = h * w
    out_dtype = feat.dtype
    if compute_dtype is None:
        compute_dtype = feat.dtype

    # ---- layer attention (tiny; plain JAX, f32 throughout) ----
    if avg_feat is None:
        avg = feat.astype(jnp.float32).mean(axis=(2, 3))             # (B, C_in)
    else:
        avg = avg_feat.reshape(b, c_in).astype(jnp.float32)
    h1 = jnp.maximum(avg @ w1.astype(jnp.float32).T + b1.reshape(1, -1), 0.0)
    att = jax.nn.sigmoid(h1 @ w2.astype(jnp.float32).T + b2.reshape(1, -1))   # (B, S)

    # ---- fold attention into the reduction-conv weight: W_b[f, c] = wred[f, c] * att[b, c//F]
    att_full = jnp.repeat(att, feat_channels, axis=1)                 # (B, C_in)
    w_scaled = (wred[None].astype(jnp.float32)
                * att_full[:, None, :]).astype(compute_dtype)          # (B, F, C_in), tiny

    feat2 = feat.reshape(b, c_in, hw)                                  # metadata-only reshape

    if hw_tile is None:
        hw_tile = _default_hw_tile(hw, c_in, feat_channels, feat.dtype, out_dtype)
    n_hw = pl.cdiv(hw, hw_tile)

    in_b = jnp.dtype(feat.dtype).itemsize
    out_b = jnp.dtype(out_dtype).itemsize
    w_b = jnp.dtype(compute_dtype).itemsize
    cost = pl.CostEstimate(
        flops=2 * b * feat_channels * c_in * hw,
        transcendentals=0,
        bytes_accessed=b * (c_in * hw * in_b + feat_channels * hw * out_b
                            + feat_channels * c_in * w_b))

    kernel = functools.partial(_reduction_conv_kernel, compute_dtype=compute_dtype)

    out = pl.pallas_call(
        kernel,
        out_shape=jax.ShapeDtypeStruct((b, feat_channels, hw), out_dtype),
        grid=(b, n_hw),
        in_specs=[
            # Per-batch scaled weight: block index constant across the inner HW
            # axis, so it stays resident in VMEM while HW tiles stream.
            pl.BlockSpec((1, feat_channels, c_in), lambda bi, ti: (bi, 0, 0)),
            # Feature map streamed in lane-dense HW tiles, native dtype.
            pl.BlockSpec((1, c_in, hw_tile), lambda bi, ti: (bi, 0, ti)),
        ],
        out_specs=pl.BlockSpec((1, feat_channels, hw_tile), lambda bi, ti: (bi, 0, ti)),
        compiler_params=pltpu.CompilerParams(
            dimension_semantics=("parallel", "parallel"),
            vmem_limit_bytes=32 * 1024 * 1024),
        cost_estimate=cost,
    )(w_scaled, feat2)

    return out.reshape(b, feat_channels, h, w)


def _reference(feat, params, feat_channels, stacked_convs):
    """Pure-JAX re-implementation of the PyTorch forward, for validation."""
    w1, b1, w2, b2, wred = params
    F, S = feat_channels, stacked_convs
    b, c_in, h, w = feat.shape
    avg = feat.mean(axis=(2, 3))                                  # (b, C_in)
    h1 = jnp.maximum(avg @ w1.T + b1.reshape(1, -1), 0.0)         # (b, C_mid)
    att = jax.nn.sigmoid(h1 @ w2.T + b2.reshape(1, -1))           # (b, S)
    conv_w = att.reshape(b, 1, S, 1) * wred.reshape(1, F, S, F)   # (b, F, S, F)
    conv_w = conv_w.reshape(b, F, c_in)
    out = jnp.einsum('bfc,bcx->bfx', conv_w, feat.reshape(b, c_in, h * w))
    return jnp.maximum(out, 0.0).reshape(b, F, h, w)


if __name__ == "__main__":
    # Small shapes consistent with the module.
    feat_channels = 8
    stacked_convs = 6
    la_down_rate = 8
    B, H, W = 2, 16, 16
    C_in = feat_channels * stacked_convs            # 48
    C_mid = C_in // la_down_rate                    # 6

    key = jax.random.PRNGKey(0)
    k_feat, k_w1, k_w2, k_wr = jax.random.split(key, 4)

    feat = jax.random.normal(k_feat, (B, C_in, H, W), dtype=jnp.float32)

    # Deterministic synthetic parameters (normal_init stds from init_weights, zero biases).
    w1 = 0.001 * jax.random.normal(k_w1, (C_mid, C_in), dtype=jnp.float32)            # la conv1 1x1
    b1 = jnp.zeros((C_mid,), dtype=jnp.float32)
    w2 = 0.001 * jax.random.normal(k_w2, (stacked_convs, C_mid), dtype=jnp.float32)   # la conv2 1x1
    b2 = jnp.zeros((stacked_convs,), dtype=jnp.float32)
    wred = 0.01 * jax.random.normal(k_wr, (feat_channels, C_in), dtype=jnp.float32)   # reduction 1x1
    params = (w1, b1, w2, b2, wred)

    ref = _reference(feat, params, feat_channels, stacked_convs)

    # f32 compute path (exact match to reference).
    out = task_decomposition(feat, params,
                             feat_channels=feat_channels,
                             stacked_convs=stacked_convs)
    out = jax.block_until_ready(out)
    assert out.shape == (B, feat_channels, H, W)
    assert jnp.allclose(out, ref, atol=1e-5, rtol=1e-5), "f32 mismatch vs reference"

    # bf16 compute path (in-kernel cast; f32 MXU accumulation).
    out_bf16 = task_decomposition(feat, params,
                                  feat_channels=feat_channels,
                                  stacked_convs=stacked_convs,
                                  compute_dtype=jnp.bfloat16)
    out_bf16 = jax.block_until_ready(out_bf16)
    assert jnp.allclose(out_bf16, ref, atol=3e-2, rtol=3e-2), "bf16 mismatch vs reference"

    # Explicit avg_feat path (as used by the TOOD head).
    avg_feat = feat.mean(axis=(2, 3), keepdims=True)
    out_avg = task_decomposition(feat, params,
                                 feat_channels=feat_channels,
                                 stacked_convs=stacked_convs,
                                 avg_feat=avg_feat)
    out_avg = jax.block_until_ready(out_avg)
    assert jnp.allclose(out_avg, ref, atol=1e-5, rtol=1e-5), "avg_feat mismatch vs reference"

    print("KERNEL_OK")
</pallas_src>

<mosaic_0001>
module attributes {stable_mosaic.version = 11 : i64} {
  func.func @_reduction_conv_kernel(%arg0: i32, %arg1: i32, %arg2: memref<1x8x48xf32, #tpu.memory_space<vmem>>, %arg3: memref<1x48x256xf32, #tpu.memory_space<vmem>>, %arg4: memref<1x8x256xf32, #tpu.memory_space<vmem>>) attributes {dimension_semantics = [#tpu.dimension_semantics<parallel>, #tpu.dimension_semantics<parallel>], iteration_bounds = array<i64: 2, 1>, scalar_prefetch = 0 : i64, scratch_operands = 0 : i64, tpu.core_type = #tpu.core_type<tc>, window_params = [{transform_indices = @transform_0, window_bounds = array<i64: 1, 8, 48>}, {transform_indices = @transform_1, window_bounds = array<i64: 1, 48, 256>}, {transform_indices = @transform_2, window_bounds = array<i64: 1, 8, 256>}]} {
    %c0 = arith.constant 0 : index
    %c0_0 = arith.constant 0 : index
    %c0_1 = arith.constant 0 : index
    %0 = vector.load %arg2[%c0, %c0_0, %c0_1] : memref<1x8x48xf32, #tpu.memory_space<vmem>>, vector<1x8x48xf32>
    %1 = vector.shape_cast %0 : vector<1x8x48xf32> to vector<8x48xf32>
    %c0_2 = arith.constant 0 : index
    %c0_3 = arith.constant 0 : index
    %c0_4 = arith.constant 0 : index
    %2 = vector.load %arg3[%c0_2, %c0_3, %c0_4] : memref<1x48x256xf32, #tpu.memory_space<vmem>>, vector<1x48x256xf32>
    %3 = vector.shape_cast %2 : vector<1x48x256xf32> to vector<48x256xf32>
    %cst = arith.constant dense<0.000000e+00> : vector<8x256xf32>
    %4 = tpu.matmul %1, %3, %cst {dimension_numbers = #tpu.dot_dimension_numbers<[1], [0], [0], [1], [0, 0, 1, 1], [], []>} : vector<8x48xf32>, vector<48x256xf32>, vector<8x256xf32> -> vector<8x256xf32>
    %cst_5 = arith.constant 0.000000e+00 : f32
    %5 = vector.broadcast %cst_5 : f32 to vector<8x256xf32>
    %6 = arith.maximumf %4, %5 : vector<8x256xf32>
    %c0_6 = arith.constant 0 : index
    %c0_7 = arith.constant 0 : index
    %c0_8 = arith.constant 0 : index
    %7 = vector.load %arg4[%c0_6, %c0_7, %c0_8] : memref<1x8x256xf32, #tpu.memory_space<vmem>>, vector<1x8x256xf32>
    %8 = vector.shape_cast %7 : vector<1x8x256xf32> to vector<8x256xf32>
    %9 = vector.shape_cast %6 : vector<8x256xf32> to vector<1x8x256xf32>
    tpu.vector_store %arg4[%c0_6, %c0_7, %c0_8], %9 {strides = array<i32>} : memref<1x8x256xf32, #tpu.memory_space<vmem>>, vector<1x8x256xf32>,
    return
  }
  func.func @transform_0(%arg0: i32, %arg1: i32) -> (i32, i32, i32) {
    %c0_i32 = arith.constant 0 : i32
    %c0_i32_0 = arith.constant 0 : i32
    %c0_i32_1 = arith.constant 0 : i32
    return %arg0, %c0_i32, %c0_i32_0 : i32, i32, i32
  }
  func.func @transform_1(%arg0: i32, %arg1: i32) -> (i32, i32, i32) {
    %c0_i32 = arith.constant 0 : i32
    %c0_i32_0 = arith.constant 0 : i32
    return %arg0, %c0_i32, %arg1 : i32, i32, i32
  }
  func.func @transform_2(%arg0: i32, %arg1: i32) -> (i32, i32, i32) {
    %c0_i32 = arith.constant 0 : i32
    %c0_i32_0 = arith.constant 0 : i32
    return %arg0, %c0_i32, %arg1 : i32, i32, i32
  }
}

</mosaic_0001>

<bundles_post_ra>
// kernel: tpu_custom_call.1
= control target key start
LH: loop header
LB: loop body
LE: loop exit
PB: predicated region body
PF: predicated region fallthrough
CT: control target
= control target key end

     0   :  { %7 = vsyncpa [#allocation3], 0  ;;  %s856_s0 = inlined_call_operand.hbm [shape: f32[2,8,48], index: 0, kind: input, shape index: {}]   ;;  %s857_s1 = inlined_call_operand.hbm [shape: f32[2,48,256], index: 1, kind: input, shape index: {}]   ;;  %s858_s2 = inlined_call_operand.hbm [shape: f32[2,8,256], index: 2, kind: output, shape index: {}]  }
   0x1   :  { %9 = vsyncpa [#allocation3 + $0x1], 0 }
   0x2   :  { %10 = vsyncpa [#allocation6], 0 }
   0x3   :  { %12 = vsyncpa [#allocation6 + $0x1], 0 }
   0x4   :  { %13 = vsyncpa [#allocation4], 0 }
   0x5   :  { %15 = vsyncpa [#allocation4 + $0x1], 0  ;;  %s688_s9 = smov 0   ;;  %s690_s10 = smov 0  }
   0x6   :  { %s692_s11 = smov 0   ;;  %s694_s12 = smov 0  }
   0x7   :  { %s696_s13 = smov 0   ;;  %s698_s14 = smov 0  }
   0x8 LB: > { %s435_s15 = sadd.s32 4294967295, %s665_s14   ;;  %s436_s16 = sadd.s32 4294967294, %s665_s14   ;;  %s665_s14 = sphi %s698_s14, %s21_s14   ;;  %s661_s13 = sphi %s696_s13, %s870_s13   ;;  %s657_s12 = sphi %s694_s12, %s869_s12   ;;  %s653_s11 = sphi %s692_s11, %s868_s11   ;;  %s649_s10 = sphi %s690_s10, %s867_s10   ;;  %s645_s9 = sphi %s688_s9, %s866_s9  }
   0x9   : > { %s33_s17 = sadd.s32 1, %s661_s13  ;;  %s40_s18 = sadd.s32 1, %s653_s11 }
   0xa   : > { %p35_p0 = scmp.ge.s32.totalorder %s33_s17, 2  ;;  %p47_p1 = scmp.ne.s32.totalorder %s653_s11, %s649_s10 }
   0xb   : > { %p48_p2 = scmp.eq.s32.totalorder %s665_s14, 0  ;;  %p53_p3 = scmp.ne.s32.totalorder %s649_s10, %s645_s9 }
   0xc   : > { %s872_s17 = smov (%p35_p0, %s33_s17), 0  ;;  %p54_p5 = scmp.eq.s32.totalorder %s435_s15, 0 }
   0xd   : > { %p729_p4 = por %p48_p2, %p47_p1  ;;  %s37_s20 = ssub.s32 %s661_s13, %s872_s17 }
   0xe   : > { %p107_p6 = scmp.eq.s32.totalorder %s435_s15, 1  ;;  %p38_p7 = scmp.eq.s32.totalorder %s37_s20, 0 }
   0xf   : > { %p735_p8 = por %p54_p5, %p53_p3  ;;  %p113_p10 = scmp.eq.s32.totalorder %s436_s16, 1 }
  0x10   : > { %p739_p9 = por %p107_p6, %p47_p1  ;;  %p472_p13 = scmp.lt.s32.totalorder %s665_s14, 2 }
  0x11   : > { %s744_s23 = scalar_select %p38_p7, %s653_s11, %s40_s18  }
  0x12   : > { %p746_p11 = por %p113_p10, %p53_p3  ;;  %s753_s25 = sand.u32 1, %s653_s11  }
  0x13   : > { %s439_s26 = sshll.u32 %s753_s25, 3  ;;  %s440_s27 = sshll.u32 %s661_s13, 7 }
  0x14   : > { %s142_s30 = scalar_lea.hbm %s856_s0, %s440_s27  ;;  %s137_s3 = scalar_lea.vmem [#allocation2], %s439_s26 }
  0x15   : > { %s144_s4 = sshll.u32 %s137_s3, 4  ;;  %p762_p0 = pnand %p472_p13, %p729_p4  ;;  %s145_s4 = int_to_ptr.vmem [resolvable:$true] %s144_s4 }
  0x16   : > { %p442_p1 = scmp.ge.s32.totalorder %s665_s14, 1  ;;  %p172_p2 = scmp.lt.s32.totalorder %s665_s14, 3 }
  0x17   : > { %s134_s6 = scalar_lea.sflag [#allocation3], %s753_s25  ;;  %p527_p3 = pneg %p762_p0 }
  0x18   : > { %s538_s7 = scalar_lea.vmem %s145_s4, 128  ;;  %s667_s8 = smov [#allocation2]  }
  0x19   : > { %p539_p5 = scmp.ne.s32.totalorder %s145_s4, %s538_s7  ;;  %s543_s15 = sshll.u32 %s667_s8, 4  ;;  %s544_s15 = int_to_ptr.vmem [resolvable:$false] %s543_s15 }
  0x1a   : > { %s545_s16 = scalar_lea.vmem %s544_s15, 256  ;;  %p546_p4 = scmp.lt.s32.totalorder %s145_s4, %s544_s15 }
  0x1b   : > { %p541_p6 = pnand %p539_p5, %p527_p3  ;;  %p547_p10 = scmp.lt.s32.totalorder %s545_s16, %s538_s7 }
  0x1d   : > { %p542_p7 = pneg %p541_p6  ;;  %p548_p13 = por %p547_p10, %p546_p4 }
  0x1f   : > { %p549_p12 = pnand %p548_p13, %p542_p7 }
  0x21   : > { %552 = shalt.err (!%p549_p12)
}
  0x22   : > { %464 = dma.hbm_to_vmem [thread:$0]  (!%p762_p0), %s142_s30, 128, %s145_s4, %s134_s6  }
  0x23   : > { %p780_p5 = pnand %p442_p1, %p172_p2  ;;  %s452_s19 = smul.u32 96, %s753_s25 }
  0x24   : > { %s453_s20 = smul.u32 1536, %s661_s13  ;;  %s152_s7 = scalar_lea.sflag [#allocation6], %s753_s25 }
  0x25   : > { %s155_s29 = scalar_lea.vmem [#allocation5], %s452_s19  ;;  %s668_s30 = smov [#allocation5]  }
  0x26   : > { %s163_s28 = scalar_lea.hbm %s857_s1, %s453_s20  ;;  %s164_s3 = sshll.u32 %s155_s29, 4  ;;  %s165_s3 = int_to_ptr.vmem [resolvable:$true] %s164_s3 }
  0x27   : > { %s566_s8 = scalar_lea.vmem %s165_s3, 1536  ;;  %s571_s4 = sshll.u32 %s668_s30, 4  ;;  %s572_s4 = int_to_ptr.vmem [resolvable:$false] %s571_s4 }
  0x28   : > { %p567_p12 = scmp.ne.s32.totalorder %s165_s3, %s566_s8  ;;  %s573_s6 = scalar_lea.vmem %s572_s4, 3072 }
  0x29   : > { %p574_p1 = scmp.lt.s32.totalorder %s165_s3, %s572_s4  ;;  %p575_p2 = scmp.lt.s32.totalorder %s573_s6, %s566_s8 }
  0x2a   : > { %p569_p6 = pnand %p567_p12, %p527_p3 }
  0x2b   : > { %p576_p4 = por %p575_p2, %p574_p1 }
  0x2c   : > { %p570_p7 = pneg %p569_p6 }
  0x2e   : > { %p577_p10 = pnand %p576_p4, %p570_p7 }
  0x30   : > { %580 = shalt.err (!%p577_p10)
}
  0x31   : > { %s669_s15 = smov 256   ;;  %s670_s16 = smov 16  }
  0x32   : > { %467 = dma.hbm_to_vmem [thread:$0]  (!%p762_p0), %s163_s28, 1536, %s165_s3, %s152_s7, %s669_s15, %s669_s15, %s670_s16  }
  0x33   : > { %176 = sbr.rel (%p780_p5) target bundleno = 284 (0x11c), region = 28  ;;  %s798_s25 = sand.u32 (!%p780_p5), 1, %s649_s10  }
  0x34   : > { %s443_s19 = sshll.u32 (!%p780_p5), %s798_s25, 3  ;;  %s179_s20 = scalar_lea.sflag (!%p780_p5), [#allocation3], %s798_s25 }
  0x35   : > { %s802_s26 = scalar_lea.vmem (!%p780_p5), [#allocation2], %s443_s19 }
  0x38   : > { %632 = dma.done.wait (%p735_p8), %s179_s20, 128  }
  0x39   : > { %634 = vsyncadd (%p735_p8), %s179_s20, 4294967168  ;;  %s454_s5 = smul.u32 96, %s798_s25  ;;  %s188_s18 = scalar_lea.sflag [#allocation6], %s798_s25 }
  0x3b   : > { %s191_s27 = scalar_lea.vmem [#allocation5], %s454_s5 }
  0x3c   : > { %636 = dma.done.wait (%p735_p8), %s188_s18, 1536  }
  0x3d   : > { %638 = vsyncadd (%p735_p8), %s188_s18, 4294965760  ;;  %v671_v0 = vmov 0.0   ;;  %v231_v1 = vld [vmem:[%s191_s27 + $0x58] sm:$0xff]  ;;  %v230_v2 = vld [vmem:[%s191_s27 + $0x50] sm:$0xff]  ;;  %vm232_vm0 = vcmask 392192   ;;  %s444_s21 = sshll.u32 %s798_s25, 4 }
  0x3e   : > { %300 = vmatprep.mubr.f32.mxu0 %v671_v0  ;;  %v229_v3 = vld [vmem:[%s191_s27 + $0x48] sm:$0xff]  ;;  %256 = vmatprep.subr.mxu0 %v231_v1  ;;  %v228_v4 = vld [vmem:[%s191_s27 + $0x40] sm:$0xff]  ;;  %v227_v5 = vld [vmem:[%s191_s27 + $0x38] sm:$0xff]  ;;  %s451_s28 = sshll.u32 %s657_s12, 8  ;;  %s216_s29 = scalar_lea.vmem [#allocation7], %s444_s21 }
  0x3f   : > { %257 = vmatpush1.msra.mxu0 %v230_v2  ;;  %v226_v6 = vld [vmem:[%s191_s27 + $0x30] sm:$0xff]  ;;  %v225_v7 = vld [vmem:[%s191_s27 + $0x28] sm:$0xff]  ;;  %v224_v8 = vld [vmem:[%s191_s27 + $0x20] sm:$0xff]  ;;  %s328_s3 = sshll.u32 %s216_s29, 4  ;;  %s326_s30 = scalar_lea.hbm %s858_s2, %s451_s28  ;;  %s329_s3 = int_to_ptr.vmem [resolvable:$true] %s328_s3 }
  0x40   : > { %258 = vmatprep.subr.mxu0 %v229_v3  ;;  %v223_v9 = vld [vmem:[%s191_s27 + $0x18] sm:$0xff]  ;;  %v222_v10 = vld [vmem:[%s191_s27 + $0x10] sm:$0xff]  ;;  %v221_v11 = vld [vmem:[%s191_s27 + $0x8] sm:$0xff]  ;;  %s312_s4 = scalar_lea.sflag [#allocation4], %s798_s25  ;;  %s581_s6 = scalar_lea.vmem %s329_s3, 256 }
  0x41   : > { %259 = vmatpush1.msra.mxu0 %v228_v4  ;;  %v220_v12 = vld [vmem:[%s191_s27] sm:$0xff]  ;;  %v219_v13 = vld [vmem:[%s802_s26] sm:$0xff]  ;;  %p582_p8 = scmp.ne.s32.totalorder %s329_s3, %s581_s6  ;;  %s672_s15 = smov [#allocation7]  }
  0x42   : > { %260 = vmatprep.subr.mxu0 %v227_v5  ;;  %s585_s12 = sshll.u32 %s672_s15, 4  ;;  %s586_s12 = int_to_ptr.vmem [resolvable:$false] %s585_s12 }
  0x43   : > { %261 = vmatpush1.msra.mxu0 %v226_v6  ;;  %p583_p0 = pnand %p582_p8, %p739_p9  ;;  %s587_s16 = scalar_lea.vmem %s586_s12, 512 }
  0x44   : > { %262 = vmatprep.subr.mxu0 %v225_v7  ;;  %p588_p13 = scmp.lt.s32.totalorder %s329_s3, %s586_s12  ;;  %p589_p5 = scmp.lt.s32.totalorder %s587_s16, %s581_s6 }
  0x45   : > { %263 = vmatpush1.msra.mxu0 %v224_v8  ;;  %p584_p3 = pneg %p583_p0 }
  0x46   : > { %264 = vmatprep.subr.mxu0 %v223_v9  ;;  %p590_p12 = por %p589_p5, %p588_p13 }
  0x47   : > { %265 = vmatpush1.msra.mxu0 %v222_v10 }
  0x48   : > { %266 = vmatprep.subr.mxu0 %v221_v11  ;;  %p591_p6 = pnand %p590_p12, %p584_p3 }
  0x49   : > { %267 = vmatpush1.msra.mxu0 %v220_v12 }
  0x4a   : > { %445 = vmatmul.mubr.msk.f32.vlgmr.msra.gmra.mxu0 %vm232_vm0, %v219_v13 }
 0x10a   : > { %v302_v14 = vpop.f32.mrf.mxu0 }
 0x10b   : > { %v307_v15 = vmax.f32 %v302_v14, 0.0 }
 0x10c   : > { %v304_v16 = vpop.f32.mrf.mxu0 }
 0x10d   : > { %309 = vst [vmem:[%s216_s29] sm:$0xff] %v307_v15  ;;  %v308_v17 = vmax.f32 %v304_v16, 0.0 }
 0x10f   : > { %310 = vst [vmem:[%s216_s29 + $0x8] sm:$0xff] %v308_v17 }
 0x110   : > { %594 = shalt.err (!%p591_p6)
}
 0x111   : > { %s595_s19 = scalar_lea.hbm %s326_s30, 256  ;;  %s599_s26 = scalar_lea.hbm %s858_s2, 512 }
 0x112   : > { %p596_p7 = scmp.ne.s32.totalorder %s326_s30, %s595_s19  ;;  %p600_p4 = scmp.lt.s32.totalorder %s326_s30, %s858_s2 }
 0x113   : > { %p601_p10 = scmp.lt.s32.totalorder %s599_s26, %s595_s19 }
 0x114   : > { %p597_p1 = pnand %p596_p7, %p739_p9 }
 0x115   : > { %p602_p8 = por %p601_p10, %p600_p4 }
 0x116   : > { %p598_p2 = pneg %p597_p1 }
 0x118   : > { %p603_p0 = pnand %p602_p8, %p598_p2 }
 0x11a   : > { %606 = shalt.err (!%p603_p0)
}
 0x11b   : > { %459 = dma.vmem_to_hbm [thread:$0]  (%p739_p9), %s329_s3, 256, %s326_s30, %s312_s4  }
 0x11c PF: > { %s340_s27 = sand.u32 1, %s645_s9   ;;  %p865_p3 = scmp.ge.s32.totalorder %s665_s14, 2 }
 0x11d   : > { %s341_s21 = scalar_lea.sflag [#allocation4], %s340_s27 }
 0x11e   : > { %p469_p13 = pnand %p865_p3, %p746_p11 }
 0x120   : > { %p470_p5 = pneg %p469_p13 }
 0x122   : > { %640 = dma.done.wait (%p470_p5), %s341_s21, 256  }
 0x123   : > { %642 = vsyncadd (%p470_p5), %s341_s21, 4294967040  ;;  %s21_s14 = sadd.s32 1, %s665_s14   ;;  %s866_s9 = smov %s649_s10 }
 0x124   : > { %p18_p12 = scmp.ge.s32.totalorder %s21_s14, 4   ;;  %s867_s10 = smov %s653_s11 }
 0x125   : > { %s868_s11 = smov %s744_s23  ;;  %s869_s12 = smov %s661_s13 }
 0x126   : > { %s870_s13 = smov %s872_s17  ;;  %20 = sbr.rel (!%p18_p12) target bundleno = 8 (0x8), region = 86 }
 0x12b   :  { %346 = vsyncpa [#allocation3], 1 }
 0x12c   :  { %348 = vsyncpa [#allocation3 + $0x1], 1 }
 0x12d   :  { %349 = vsyncpa [#allocation6], 1 }
 0x12e   :  { %351 = vsyncpa [#allocation6 + $0x1], 1 }
 0x12f   :  { %352 = vsyncpa [#allocation4], 1 }
 0x130   :  { %354 = vsyncpa [#allocation4 + $0x1], 1 }

</bundles_post_ra>
